<compile_context>
chip_gen: v7x
topology: tpu7x:2x2x1
jax: 0.10.0
libtpu: 0.0.40
codegen_flags: <defaults>
</compile_context>

<pallas_src>
from functools import partial

import jax
import jax.numpy as jnp
from jax.experimental import pallas as pl
from jax.experimental.pallas import tpu as pltpu

BN_EPS = 1e-5


def _round_up(x, m):
    return (x + m - 1) // m * m


def _tap_offsets(ksize):
    """Tap offsets d (relative to the output position) for TF 'same' padding."""
    pad_l = (ksize - 1) // 2
    return tuple(k - pad_l for k in range(ksize))


# ----------------------------------------------------------------------------
# In-kernel helper: im2col columns for a 'same'-padded stride-1 conv.
#   x     : (C, W) with W = B_blk * L_pad (batch elements side-by-side in lanes)
#   masks : dict d -> (1, W) float mask, 1 where the tap stays inside its own
#           batch element's valid [0, L) range.
# Returns (K*C, W) with column index = k*C + c (k = tap index).
# ----------------------------------------------------------------------------
def _im2col(x, ksize, masks):
    if ksize == 1:
        return x
    W = x.shape[1]
    pieces = []
    for d in _tap_offsets(ksize):
        if d == 0:
            pieces.append(x)
        else:
            rolled = pltpu.roll(x, shift=(-d) % W, axis=1)  # rolled[:, l] = x[:, (l+d) % W]
            pieces.append(rolled * masks[d])                # zero out-of-range / cross-batch taps
    return jnp.concatenate(pieces, axis=0)


# ----------------------------------------------------------------------------
# Fused ResNetBlock kernel: one batch-block (B_blk elements) per grid step.
# Weight refs already contain BN scale; shift refs contain BN shift + conv bias.
# When has_res, w1_ref/s1_ref carry the stacked [layer1 ; residual] rows.
# ----------------------------------------------------------------------------
def resnet_block_kernel(x_ref, w1_ref, s1_ref, w2_ref, s2_ref, w3_ref, s3_ref,
                        out_ref, *, ksizes, has_res, c_out_p, l_pad, l_valid):
    x = x_ref[...]                                      # (C_in_p, W)
    W = x.shape[1]

    # --- hoisted lane-position masks, shared across all three conv layers ----
    lane = jax.lax.broadcasted_iota(jnp.int32, (1, W), 1)
    pos = lane % l_pad                                  # position within one batch element
    d_union = sorted({d for k in ksizes for d in _tap_offsets(k) if d != 0})
    masks = {d: jnp.logical_and(pos + d >= 0, pos + d < l_valid).astype(x.dtype)
             for d in d_union}

    # --- layer 1 (+ fused 1x1 residual rows when has_res) ---------------------
    cols = _im2col(x, ksizes[0], masks)
    y = jnp.dot(w1_ref[...], cols.astype(w1_ref.dtype),
                preferred_element_type=jnp.float32) + s1_ref[...]
    h = jnp.maximum(y[:c_out_p], 0.0)
    res = y[c_out_p:] if has_res else None              # residual branch (no ReLU)

    # --- layer 2 --------------------------------------------------------------
    cols = _im2col(h, ksizes[1], masks)
    h = jnp.maximum(jnp.dot(w2_ref[...], cols.astype(w2_ref.dtype),
                            preferred_element_type=jnp.float32) + s2_ref[...], 0.0)

    # --- layer 3 --------------------------------------------------------------
    cols = _im2col(h, ksizes[2], masks)
    h = jnp.maximum(jnp.dot(w3_ref[...], cols.astype(w3_ref.dtype),
                            preferred_element_type=jnp.float32) + s3_ref[...], 0.0)

    if has_res:
        h = h + res
    out_ref[...] = h.astype(out_ref.dtype)


# ----------------------------------------------------------------------------
# Wrapper: fold BN into weights/shift, pad channels & lanes, one pallas_call.
# ----------------------------------------------------------------------------
def _fold_conv_bn(p, c_in_pad, c_out_pad, wdtype):
    """Fold inference BN (running stats) + conv bias into weights and a shift."""
    scale = p["gamma"] / jnp.sqrt(p["var"] + BN_EPS)                 # (C_out,)
    shift = p["beta"] + scale * (p["bias"] - p["mean"])              # (C_out,)
    w = p["w"] * scale[:, None, None]                                # (C_out, C_in, K)
    c_out, c_in, k = w.shape
    w = jnp.pad(w, ((0, c_out_pad - c_out), (0, c_in_pad - c_in), (0, 0)))
    shift = jnp.pad(shift, (0, c_out_pad - c_out))
    # im2col weight layout: column index = k * c_in_pad + c
    w2d = jnp.transpose(w, (0, 2, 1)).reshape(c_out_pad, k * c_in_pad)
    return w2d.astype(wdtype), shift[:, None].astype(jnp.float32), k


def resnet_block(x, params, *, use_bf16=False, target_lanes=2048):
    N, C_in, L = x.shape
    C_out = params["b1"]["w"].shape[0]
    has_res = "res" in params                 # match_channels path (C_in != C_out)

    C_in_p = _round_up(C_in, 8)
    C_out_p = _round_up(C_out, 8)
    L_pad = _round_up(L, 128)

    # Batch block: amortize per-step overhead; keep >= 2 grid steps when N > 1
    # so both v7x TensorCores get work via dimension_semantics=("parallel",).
    b_blk = max(1, target_lanes // L_pad)
    b_blk = min(b_blk, N)
    if N > 1 and -(-N // b_blk) < 2:
        b_blk = -(-N // 2)
    G = -(-N // b_blk)
    N_pad = G * b_blk
    W = b_blk * L_pad

    # Lay batch elements side-by-side along the lane axis: (C_in_p, N_pad*L_pad).
    x_p = jnp.pad(x, ((0, N_pad - N), (0, C_in_p - C_in), (0, L_pad - L)))
    x2d = jnp.transpose(x_p, (1, 0, 2)).reshape(C_in_p, N_pad * L_pad)

    wdtype = jnp.bfloat16 if use_bf16 else x.dtype
    w1, s1, k1 = _fold_conv_bn(params["b1"], C_in_p, C_out_p, wdtype)
    w2, s2, k2 = _fold_conv_bn(params["b2"], C_out_p, C_out_p, wdtype)
    w3, s3, k3 = _fold_conv_bn(params["b3"], C_out_p, C_out_p, wdtype)

    if has_res:
        # Fuse the 1x1 residual conv+BN into the first matmul: stack its rows
        # below w1, placed in the d=0 tap-column block (which multiplies x).
        wr, sr, _ = _fold_conv_bn(params["res"], C_in_p, C_out_p, wdtype)
        pad_l1 = (k1 - 1) // 2
        wr_ext = jnp.zeros((C_out_p, k1 * C_in_p), wdtype)
        wr_ext = wr_ext.at[:, pad_l1 * C_in_p:(pad_l1 + 1) * C_in_p].set(wr)
        w1 = jnp.concatenate([w1, wr_ext], axis=0)       # (2*C_out_p, K1*C_in_p)
        s1 = jnp.concatenate([s1, sr], axis=0)           # (2*C_out_p, 1)

    def const2d(a):
        return pl.BlockSpec(a.shape, lambda n: (0, 0))

    inputs = [x2d, w1, s1, w2, s2, w3, s3]
    in_specs = [pl.BlockSpec((C_in_p, W), lambda n: (0, n)),
                const2d(w1), const2d(s1), const2d(w2), const2d(s2),
                const2d(w3), const2d(s3)]

    kernel = partial(resnet_block_kernel, ksizes=(k1, k2, k3), has_res=has_res,
                     c_out_p=C_out_p, l_pad=L_pad, l_valid=L)

    flops = 2 * N_pad * L_pad * (w1.shape[0] * w1.shape[1]
                                 + w2.shape[0] * w2.shape[1]
                                 + w3.shape[0] * w3.shape[1])
    bytes_accessed = int(sum(a.size * a.dtype.itemsize for a in inputs)
                         + C_out_p * N_pad * L_pad * x.dtype.itemsize)

    out2d = pl.pallas_call(
        kernel,
        out_shape=jax.ShapeDtypeStruct((C_out_p, N_pad * L_pad), x.dtype),
        grid_spec=pltpu.PrefetchScalarGridSpec(
            num_scalar_prefetch=0,
            grid=(G,),
            in_specs=in_specs,
            out_specs=pl.BlockSpec((C_out_p, W), lambda n: (0, n)),
        ),
        compiler_params=pltpu.CompilerParams(
            dimension_semantics=("parallel",)),
        cost_estimate=pl.CostEstimate(flops=int(flops), transcendentals=0,
                                      bytes_accessed=bytes_accessed),
    )(*inputs)

    out = out2d.reshape(C_out_p, N_pad, L_pad).transpose(1, 0, 2)
    return out[:N, :C_out, :L]


# ----------------------------------------------------------------------------
# Parameter construction (deterministic, synthetic)
# ----------------------------------------------------------------------------
def make_conv_bn_params(key, c_in, c_out, ksize):
    ks = jax.random.split(key, 6)
    w = jax.random.normal(ks[0], (c_out, c_in, ksize), jnp.float32) * 0.1
    bias = jax.random.normal(ks[1], (c_out,), jnp.float32) * 0.1
    gamma = 0.5 + jax.random.uniform(ks[2], (c_out,), jnp.float32)
    beta = jax.random.normal(ks[3], (c_out,), jnp.float32) * 0.1
    mean = jax.random.normal(ks[4], (c_out,), jnp.float32) * 0.1
    var = 0.5 + jax.random.uniform(ks[5], (c_out,), jnp.float32)
    return dict(w=w, bias=bias, gamma=gamma, beta=beta, mean=mean, var=var)


# ----------------------------------------------------------------------------
# Pure-JAX reference (mirrors the PyTorch module exactly)
# ----------------------------------------------------------------------------
def conv1d_same_ref(x, w, bias):
    K = w.shape[2]
    pad_l = (K - 1) // 2
    pad_r = (K - 1) - pad_l
    xp = jnp.pad(x, ((0, 0), (0, 0), (pad_l, pad_r)))
    y = jax.lax.conv_general_dilated(
        xp, w, window_strides=(1,), padding="VALID",
        dimension_numbers=("NCH", "OIH", "NCH"))
    return y + bias[None, :, None]


def bn_ref(x, p):
    return (p["gamma"][None, :, None] * (x - p["mean"][None, :, None])
            / jnp.sqrt(p["var"][None, :, None] + BN_EPS)
            + p["beta"][None, :, None])


def resnet_block_ref(x, params):
    h = x
    for key in ("b1", "b2", "b3"):
        p = params[key]
        h = jnp.maximum(bn_ref(conv1d_same_ref(h, p["w"], p["bias"]), p), 0.0)
    if "res" in params:  # match_channels path
        pr = params["res"]
        h = h + bn_ref(conv1d_same_ref(x, pr["w"], pr["bias"]), pr)
    return h


# ----------------------------------------------------------------------------
if __name__ == "__main__":
    KERNEL_SIZES = [8, 5, 3]
    root = jax.random.PRNGKey(0)

    # --- test 1: match_channels path (C_in != C_out, residual 1x1 conv+BN) ---
    N, C_IN, C_OUT, L = 2, 4, 8, 128
    kx, k1, k2, k3, kr, root = jax.random.split(root, 6)
    x = jax.random.normal(kx, (N, C_IN, L), jnp.float32)
    channels = [C_IN, C_OUT, C_OUT, C_OUT]
    params = {
        "b1": make_conv_bn_params(k1, channels[0], channels[1], KERNEL_SIZES[0]),
        "b2": make_conv_bn_params(k2, channels[1], channels[2], KERNEL_SIZES[1]),
        "b3": make_conv_bn_params(k3, channels[2], channels[3], KERNEL_SIZES[2]),
        "res": make_conv_bn_params(kr, C_IN, C_OUT, 1),
    }
    out = jax.block_until_ready(resnet_block(x, params))
    ref = jax.block_until_ready(resnet_block_ref(x, params))
    assert out.shape == (N, C_OUT, L), out.shape
    assert jnp.allclose(out, ref, atol=1e-4, rtol=1e-4), \
        float(jnp.max(jnp.abs(out - ref)))

    # --- test 2: identity path (C_in == C_out, no residual branch) + padding --
    N2, C2, L2 = 3, 8, 96   # exercises batch padding (N_pad) and lane padding (L_pad)
    kx2, q1, q2, q3 = jax.random.split(root, 4)
    x2 = jax.random.normal(kx2, (N2, C2, L2), jnp.float32)
    params2 = {
        "b1": make_conv_bn_params(q1, C2, C2, KERNEL_SIZES[0]),
        "b2": make_conv_bn_params(q2, C2, C2, KERNEL_SIZES[1]),
        "b3": make_conv_bn_params(q3, C2, C2, KERNEL_SIZES[2]),
    }
    out2 = jax.block_until_ready(resnet_block(x2, params2))
    ref2 = jax.block_until_ready(resnet_block_ref(x2, params2))
    assert out2.shape == (N2, C2, L2), out2.shape
    assert jnp.allclose(out2, ref2, atol=1e-4, rtol=1e-4), \
        float(jnp.max(jnp.abs(out2 - ref2)))

    print("KERNEL_OK")
</pallas_src>

<mosaic_0001>
module attributes {stable_mosaic.version = 11 : i64} {
  func.func @resnet_block_kernel(%arg0: i32, %arg1: memref<8x128xf32, #tpu.memory_space<vmem>>, %arg2: memref<16x64xf32, #tpu.memory_space<vmem>>, %arg3: memref<16x1xf32, #tpu.memory_space<vmem>>, %arg4: memref<8x40xf32, #tpu.memory_space<vmem>>, %arg5: memref<8x1xf32, #tpu.memory_space<vmem>>, %arg6: memref<8x24xf32, #tpu.memory_space<vmem>>, %arg7: memref<8x1xf32, #tpu.memory_space<vmem>>, %arg8: memref<8x128xf32, #tpu.memory_space<vmem>>) attributes {dimension_semantics = [#tpu.dimension_semantics<parallel>], iteration_bounds = array<i64: 2>, scalar_prefetch = 0 : i64, scratch_operands = 0 : i64, tpu.core_type = #tpu.core_type<tc>, window_params = [{transform_indices = @transform_0, window_bounds = array<i64: 8, 128>}, {pipeline_mode = #tpu.pipeline_mode<synchronous>, transform_indices = @transform_1, window_bounds = array<i64: 16, 64>}, {pipeline_mode = #tpu.pipeline_mode<synchronous>, transform_indices = @transform_2, window_bounds = array<i64: 16, 1>}, {pipeline_mode = #tpu.pipeline_mode<synchronous>, transform_indices = @transform_3, window_bounds = array<i64: 8, 40>}, {pipeline_mode = #tpu.pipeline_mode<synchronous>, transform_indices = @transform_4, window_bounds = array<i64: 8, 1>}, {pipeline_mode = #tpu.pipeline_mode<synchronous>, transform_indices = @transform_5, window_bounds = array<i64: 8, 24>}, {pipeline_mode = #tpu.pipeline_mode<synchronous>, transform_indices = @transform_6, window_bounds = array<i64: 8, 1>}, {transform_indices = @transform_7, window_bounds = array<i64: 8, 128>}]} {
    %c0 = arith.constant 0 : index
    %c0_0 = arith.constant 0 : index
    %0 = vector.load %arg1[%c0, %c0_0] : memref<8x128xf32, #tpu.memory_space<vmem>>, vector<8x128xf32>
    %1 = tpu.iota {dimensions = array<i32: 1>} : vector<1x128xi32>
    %c128_i32 = arith.constant 128 : i32
    %c0_i32 = arith.constant 0 : i32
    %2 = arith.cmpi eq, %c128_i32, %c0_i32 : i32
    %c1_i32 = arith.constant 1 : i32
    %3 = arith.select %2, %c1_i32, %c128_i32 : i32
    %4 = vector.broadcast %3 : i32 to vector<1x128xi32>
    %5 = arith.remsi %1, %4 : vector<1x128xi32>
    %c0_i32_1 = arith.constant 0 : i32
    %6 = vector.broadcast %c0_i32_1 : i32 to vector<1x128xi32>
    %7 = arith.cmpi ne, %5, %6 : vector<1x128xi32>
    %c0_i32_2 = arith.constant 0 : i32
    %8 = vector.broadcast %c0_i32_2 : i32 to vector<1x128xi32>
    %9 = arith.cmpi slt, %5, %8 : vector<1x128xi32>
    %c0_i32_3 = arith.constant 0 : i32
    %10 = arith.cmpi slt, %3, %c0_i32_3 : i32
    %11 = vector.broadcast %10 : i1 to vector<1x128xi1>
    %12 = vector.broadcast %11 : vector<1x128xi1> to vector<1x128xi1>
    %13 = arith.xori %9, %12 : vector<1x128xi1>
    %14 = arith.andi %13, %7 : vector<1x128xi1>
    %15 = vector.broadcast %3 : i32 to vector<1x128xi32>
    %16 = arith.addi %5, %15 : vector<1x128xi32>
    %17 = arith.select %14, %16, %5 : vector<1x128xi1>, vector<1x128xi32>
    %c-3_i32 = arith.constant -3 : i32
    %18 = vector.broadcast %c-3_i32 : i32 to vector<1x128xi32>
    %19 = arith.addi %17, %18 : vector<1x128xi32>
    %c0_i32_4 = arith.constant 0 : i32
    %20 = vector.broadcast %c0_i32_4 : i32 to vector<1x128xi32>
    %21 = arith.cmpi sge, %19, %20 : vector<1x128xi32>
    %c-3_i32_5 = arith.constant -3 : i32
    %22 = vector.broadcast %c-3_i32_5 : i32 to vector<1x128xi32>
    %23 = arith.addi %17, %22 : vector<1x128xi32>
    %c128_i32_6 = arith.constant 128 : i32
    %24 = vector.broadcast %c128_i32_6 : i32 to vector<1x128xi32>
    %25 = arith.cmpi slt, %23, %24 : vector<1x128xi32>
    %26 = arith.andi %21, %25 : vector<1x128xi1>
    %27 = arith.extui %26 : vector<1x128xi1> to vector<1x128xi32>
    %28 = arith.sitofp %27 : vector<1x128xi32> to vector<1x128xf32>
    %c-2_i32 = arith.constant -2 : i32
    %29 = vector.broadcast %c-2_i32 : i32 to vector<1x128xi32>
    %30 = arith.addi %17, %29 : vector<1x128xi32>
    %c0_i32_7 = arith.constant 0 : i32
    %31 = vector.broadcast %c0_i32_7 : i32 to vector<1x128xi32>
    %32 = arith.cmpi sge, %30, %31 : vector<1x128xi32>
    %c-2_i32_8 = arith.constant -2 : i32
    %33 = vector.broadcast %c-2_i32_8 : i32 to vector<1x128xi32>
    %34 = arith.addi %17, %33 : vector<1x128xi32>
    %c128_i32_9 = arith.constant 128 : i32
    %35 = vector.broadcast %c128_i32_9 : i32 to vector<1x128xi32>
    %36 = arith.cmpi slt, %34, %35 : vector<1x128xi32>
    %37 = arith.andi %32, %36 : vector<1x128xi1>
    %38 = arith.extui %37 : vector<1x128xi1> to vector<1x128xi32>
    %39 = arith.sitofp %38 : vector<1x128xi32> to vector<1x128xf32>
    %c-1_i32 = arith.constant -1 : i32
    %40 = vector.broadcast %c-1_i32 : i32 to vector<1x128xi32>
    %41 = arith.addi %17, %40 : vector<1x128xi32>
    %c0_i32_10 = arith.constant 0 : i32
    %42 = vector.broadcast %c0_i32_10 : i32 to vector<1x128xi32>
    %43 = arith.cmpi sge, %41, %42 : vector<1x128xi32>
    %c-1_i32_11 = arith.constant -1 : i32
    %44 = vector.broadcast %c-1_i32_11 : i32 to vector<1x128xi32>
    %45 = arith.addi %17, %44 : vector<1x128xi32>
    %c128_i32_12 = arith.constant 128 : i32
    %46 = vector.broadcast %c128_i32_12 : i32 to vector<1x128xi32>
    %47 = arith.cmpi slt, %45, %46 : vector<1x128xi32>
    %48 = arith.andi %43, %47 : vector<1x128xi1>
    %49 = arith.extui %48 : vector<1x128xi1> to vector<1x128xi32>
    %50 = arith.sitofp %49 : vector<1x128xi32> to vector<1x128xf32>
    %c1_i32_13 = arith.constant 1 : i32
    %51 = vector.broadcast %c1_i32_13 : i32 to vector<1x128xi32>
    %52 = arith.addi %17, %51 : vector<1x128xi32>
    %c0_i32_14 = arith.constant 0 : i32
    %53 = vector.broadcast %c0_i32_14 : i32 to vector<1x128xi32>
    %54 = arith.cmpi sge, %52, %53 : vector<1x128xi32>
    %c1_i32_15 = arith.constant 1 : i32
    %55 = vector.broadcast %c1_i32_15 : i32 to vector<1x128xi32>
    %56 = arith.addi %17, %55 : vector<1x128xi32>
    %c128_i32_16 = arith.constant 128 : i32
    %57 = vector.broadcast %c128_i32_16 : i32 to vector<1x128xi32>
    %58 = arith.cmpi slt, %56, %57 : vector<1x128xi32>
    %59 = arith.andi %54, %58 : vector<1x128xi1>
    %60 = arith.extui %59 : vector<1x128xi1> to vector<1x128xi32>
    %61 = arith.sitofp %60 : vector<1x128xi32> to vector<1x128xf32>
    %c2_i32 = arith.constant 2 : i32
    %62 = vector.broadcast %c2_i32 : i32 to vector<1x128xi32>
    %63 = arith.addi %17, %62 : vector<1x128xi32>
    %c0_i32_17 = arith.constant 0 : i32
    %64 = vector.broadcast %c0_i32_17 : i32 to vector<1x128xi32>
    %65 = arith.cmpi sge, %63, %64 : vector<1x128xi32>
    %c2_i32_18 = arith.constant 2 : i32
    %66 = vector.broadcast %c2_i32_18 : i32 to vector<1x128xi32>
    %67 = arith.addi %17, %66 : vector<1x128xi32>
    %c128_i32_19 = arith.constant 128 : i32
    %68 = vector.broadcast %c128_i32_19 : i32 to vector<1x128xi32>
    %69 = arith.cmpi slt, %67, %68 : vector<1x128xi32>
    %70 = arith.andi %65, %69 : vector<1x128xi1>
    %71 = arith.extui %70 : vector<1x128xi1> to vector<1x128xi32>
    %72 = arith.sitofp %71 : vector<1x128xi32> to vector<1x128xf32>
    %c3_i32 = arith.constant 3 : i32
    %73 = vector.broadcast %c3_i32 : i32 to vector<1x128xi32>
    %74 = arith.addi %17, %73 : vector<1x128xi32>
    %c0_i32_20 = arith.constant 0 : i32
    %75 = vector.broadcast %c0_i32_20 : i32 to vector<1x128xi32>
    %76 = arith.cmpi sge, %74, %75 : vector<1x128xi32>
    %c3_i32_21 = arith.constant 3 : i32
    %77 = vector.broadcast %c3_i32_21 : i32 to vector<1x128xi32>
    %78 = arith.addi %17, %77 : vector<1x128xi32>
    %c128_i32_22 = arith.constant 128 : i32
    %79 = vector.broadcast %c128_i32_22 : i32 to vector<1x128xi32>
    %80 = arith.cmpi slt, %78, %79 : vector<1x128xi32>
    %81 = arith.andi %76, %80 : vector<1x128xi1>
    %82 = arith.extui %81 : vector<1x128xi1> to vector<1x128xi32>
    %83 = arith.sitofp %82 : vector<1x128xi32> to vector<1x128xf32>
    %c4_i32 = arith.constant 4 : i32
    %84 = vector.broadcast %c4_i32 : i32 to vector<1x128xi32>
    %85 = arith.addi %17, %84 : vector<1x128xi32>
    %c0_i32_23 = arith.constant 0 : i32
    %86 = vector.broadcast %c0_i32_23 : i32 to vector<1x128xi32>
    %87 = arith.cmpi sge, %85, %86 : vector<1x128xi32>
    %c4_i32_24 = arith.constant 4 : i32
    %88 = vector.broadcast %c4_i32_24 : i32 to vector<1x128xi32>
    %89 = arith.addi %17, %88 : vector<1x128xi32>
    %c128_i32_25 = arith.constant 128 : i32
    %90 = vector.broadcast %c128_i32_25 : i32 to vector<1x128xi32>
    %91 = arith.cmpi slt, %89, %90 : vector<1x128xi32>
    %92 = arith.andi %87, %91 : vector<1x128xi1>
    %93 = arith.extui %92 : vector<1x128xi1> to vector<1x128xi32>
    %94 = arith.sitofp %93 : vector<1x128xi32> to vector<1x128xf32>
    %c3_i32_26 = arith.constant 3 : i32
    %95 = tpu.dynamic_rotate %0 by %c3_i32_26 dim 1 : vector<8x128xf32>, i32 -> vector<8x128xf32>
    %96 = vector.broadcast %28 : vector<1x128xf32> to vector<8x128xf32>
    %97 = arith.mulf %95, %96 : vector<8x128xf32>
    %c2_i32_27 = arith.constant 2 : i32
    %98 = tpu.dynamic_rotate %0 by %c2_i32_27 dim 1 : vector<8x128xf32>, i32 -> vector<8x128xf32>
    %99 = vector.broadcast %39 : vector<1x128xf32> to vector<8x128xf32>
    %100 = arith.mulf %98, %99 : vector<8x128xf32>
    %c1_i32_28 = arith.constant 1 : i32
    %101 = tpu.dynamic_rotate %0 by %c1_i32_28 dim 1 : vector<8x128xf32>, i32 -> vector<8x128xf32>
    %102 = vector.broadcast %50 : vector<1x128xf32> to vector<8x128xf32>
    %103 = arith.mulf %101, %102 : vector<8x128xf32>
    %c127_i32 = arith.constant 127 : i32
    %104 = tpu.dynamic_rotate %0 by %c127_i32 dim 1 : vector<8x128xf32>, i32 -> vector<8x128xf32>
    %105 = vector.broadcast %61 : vector<1x128xf32> to vector<8x128xf32>
    %106 = arith.mulf %104, %105 : vector<8x128xf32>
    %c126_i32 = arith.constant 126 : i32
    %107 = tpu.dynamic_rotate %0 by %c126_i32 dim 1 : vector<8x128xf32>, i32 -> vector<8x128xf32>
    %108 = vector.broadcast %72 : vector<1x128xf32> to vector<8x128xf32>
    %109 = arith.mulf %107, %108 : vector<8x128xf32>
    %c125_i32 = arith.constant 125 : i32
    %110 = tpu.dynamic_rotate %0 by %c125_i32 dim 1 : vector<8x128xf32>, i32 -> vector<8x128xf32>
    %111 = vector.broadcast %83 : vector<1x128xf32> to vector<8x128xf32>
    %112 = arith.mulf %110, %111 : vector<8x128xf32>
    %c124_i32 = arith.constant 124 : i32
    %113 = tpu.dynamic_rotate %0 by %c124_i32 dim 1 : vector<8x128xf32>, i32 -> vector<8x128xf32>
    %114 = vector.broadcast %94 : vector<1x128xf32> to vector<8x128xf32>
    %115 = arith.mulf %113, %114 : vector<8x128xf32>
    %116 = tpu.concatenate %97, %100, %103, %0, %106, %109, %112, %115 in 0 : vector<8x128xf32>, vector<8x128xf32>, vector<8x128xf32>, vector<8x128xf32>, vector<8x128xf32>, vector<8x128xf32>, vector<8x128xf32>, vector<8x128xf32> -> vector<64x128xf32>
    %c0_29 = arith.constant 0 : index
    %c0_30 = arith.constant 0 : index
    %117 = vector.load %arg2[%c0_29, %c0_30] : memref<16x64xf32, #tpu.memory_space<vmem>>, vector<16x64xf32>
    %cst = arith.constant dense<0.000000e+00> : vector<16x128xf32>
    %118 = tpu.matmul %117, %116, %cst {dimension_numbers = #tpu.dot_dimension_numbers<[1], [0], [0], [1], [0, 0, 1, 1], [], []>} : vector<16x64xf32>, vector<64x128xf32>, vector<16x128xf32> -> vector<16x128xf32>
    %c0_31 = arith.constant 0 : index
    %c0_32 = arith.constant 0 : index
    %119 = vector.load %arg3[%c0_31, %c0_32] : memref<16x1xf32, #tpu.memory_space<vmem>>, vector<16x1xf32>
    %120 = vector.broadcast %119 : vector<16x1xf32> to vector<16x128xf32>
    %121 = arith.addf %118, %120 : vector<16x128xf32>
    %122 = vector.extract_strided_slice %121 {offsets = [0, 0], sizes = [8, 128], strides = [1, 1]} : vector<16x128xf32> to vector<8x128xf32>
    %cst_33 = arith.constant 0.000000e+00 : f32
    %123 = vector.broadcast %cst_33 : f32 to vector<8x128xf32>
    %124 = arith.maximumf %122, %123 : vector<8x128xf32>
    %125 = vector.extract_strided_slice %121 {offsets = [8, 0], sizes = [8, 128], strides = [1, 1]} : vector<16x128xf32> to vector<8x128xf32>
    %c2_i32_34 = arith.constant 2 : i32
    %126 = tpu.dynamic_rotate %124 by %c2_i32_34 dim 1 : vector<8x128xf32>, i32 -> vector<8x128xf32>
    %127 = vector.broadcast %39 : vector<1x128xf32> to vector<8x128xf32>
    %128 = arith.mulf %126, %127 : vector<8x128xf32>
    %c1_i32_35 = arith.constant 1 : i32
    %129 = tpu.dynamic_rotate %124 by %c1_i32_35 dim 1 : vector<8x128xf32>, i32 -> vector<8x128xf32>
    %130 = vector.broadcast %50 : vector<1x128xf32> to vector<8x128xf32>
    %131 = arith.mulf %129, %130 : vector<8x128xf32>
    %c127_i32_36 = arith.constant 127 : i32
    %132 = tpu.dynamic_rotate %124 by %c127_i32_36 dim 1 : vector<8x128xf32>, i32 -> vector<8x128xf32>
    %133 = vector.broadcast %61 : vector<1x128xf32> to vector<8x128xf32>
    %134 = arith.mulf %132, %133 : vector<8x128xf32>
    %c126_i32_37 = arith.constant 126 : i32
    %135 = tpu.dynamic_rotate %124 by %c126_i32_37 dim 1 : vector<8x128xf32>, i32 -> vector<8x128xf32>
    %136 = vector.broadcast %72 : vector<1x128xf32> to vector<8x128xf32>
    %137 = arith.mulf %135, %136 : vector<8x128xf32>
    %138 = tpu.concatenate %128, %131, %124, %134, %137 in 0 : vector<8x128xf32>, vector<8x128xf32>, vector<8x128xf32>, vector<8x128xf32>, vector<8x128xf32> -> vector<40x128xf32>
    %c0_38 = arith.constant 0 : index
    %c0_39 = arith.constant 0 : index
    %139 = vector.load %arg4[%c0_38, %c0_39] : memref<8x40xf32, #tpu.memory_space<vmem>>, vector<8x40xf32>
    %cst_40 = arith.constant dense<0.000000e+00> : vector<8x128xf32>
    %140 = tpu.matmul %139, %138, %cst_40 {dimension_numbers = #tpu.dot_dimension_numbers<[1], [0], [0], [1], [0, 0, 1, 1], [], []>} : vector<8x40xf32>, vector<40x128xf32>, vector<8x128xf32> -> vector<8x128xf32>
    %c0_41 = arith.constant 0 : index
    %c0_42 = arith.constant 0 : index
    %141 = vector.load %arg5[%c0_41, %c0_42] : memref<8x1xf32, #tpu.memory_space<vmem>>, vector<8x1xf32>
    %142 = vector.broadcast %141 : vector<8x1xf32> to vector<8x128xf32>
    %143 = arith.addf %140, %142 : vector<8x128xf32>
    %cst_43 = arith.constant 0.000000e+00 : f32
    %144 = vector.broadcast %cst_43 : f32 to vector<8x128xf32>
    %145 = arith.maximumf %143, %144 : vector<8x128xf32>
    %c1_i32_44 = arith.constant 1 : i32
    %146 = tpu.dynamic_rotate %145 by %c1_i32_44 dim 1 : vector<8x128xf32>, i32 -> vector<8x128xf32>
    %147 = vector.broadcast %50 : vector<1x128xf32> to vector<8x128xf32>
    %148 = arith.mulf %146, %147 : vector<8x128xf32>
    %c127_i32_45 = arith.constant 127 : i32
    %149 = tpu.dynamic_rotate %145 by %c127_i32_45 dim 1 : vector<8x128xf32>, i32 -> vector<8x128xf32>
    %150 = vector.broadcast %61 : vector<1x128xf32> to vector<8x128xf32>
    %151 = arith.mulf %149, %150 : vector<8x128xf32>
    %152 = tpu.concatenate %148, %145, %151 in 0 : vector<8x128xf32>, vector<8x128xf32>, vector<8x128xf32> -> vector<24x128xf32>
    %c0_46 = arith.constant 0 : index
    %c0_47 = arith.constant 0 : index
    %153 = vector.load %arg6[%c0_46, %c0_47] : memref<8x24xf32, #tpu.memory_space<vmem>>, vector<8x24xf32>
    %cst_48 = arith.constant dense<0.000000e+00> : vector<8x128xf32>
    %154 = tpu.matmul %153, %152, %cst_48 {dimension_numbers = #tpu.dot_dimension_numbers<[1], [0], [0], [1], [0, 0, 1, 1], [], []>} : vector<8x24xf32>, vector<24x128xf32>, vector<8x128xf32> -> vector<8x128xf32>
    %c0_49 = arith.constant 0 : index
    %c0_50 = arith.constant 0 : index
    %155 = vector.load %arg7[%c0_49, %c0_50] : memref<8x1xf32, #tpu.memory_space<vmem>>, vector<8x1xf32>
    %156 = vector.broadcast %155 : vector<8x1xf32> to vector<8x128xf32>
    %157 = arith.addf %154, %156 : vector<8x128xf32>
    %cst_51 = arith.constant 0.000000e+00 : f32
    %158 = vector.broadcast %cst_51 : f32 to vector<8x128xf32>
    %159 = arith.maximumf %157, %158 : vector<8x128xf32>
    %160 = arith.addf %159, %125 : vector<8x128xf32>
    %c0_52 = arith.constant 0 : index
    %c0_53 = arith.constant 0 : index
    %161 = vector.load %arg8[%c0_52, %c0_53] : memref<8x128xf32, #tpu.memory_space<vmem>>, vector<8x128xf32>
    tpu.vector_store %arg8[%c0_52, %c0_53], %160 {strides = array<i32>} : memref<8x128xf32, #tpu.memory_space<vmem>>, vector<8x128xf32>,
    return
  }
  func.func @transform_0(%arg0: i32) -> (i32, i32) {
    %c0_i32 = arith.constant 0 : i32
    %c0_i32_0 = arith.constant 0 : i32
    return %c0_i32, %arg0 : i32, i32
  }
  func.func @transform_1(%arg0: i32) -> (i32, i32) {
    %c0_i32 = arith.constant 0 : i32
    %c0_i32_0 = arith.constant 0 : i32
    %c0_i32_1 = arith.constant 0 : i32
    return %c0_i32, %c0_i32_0 : i32, i32
  }
  func.func @transform_2(%arg0: i32) -> (i32, i32) {
    %c0_i32 = arith.constant 0 : i32
    %c0_i32_0 = arith.constant 0 : i32
    %c0_i32_1 = arith.constant 0 : i32
    return %c0_i32, %c0_i32_0 : i32, i32
  }
  func.func @transform_3(%arg0: i32) -> (i32, i32) {
    %c0_i32 = arith.constant 0 : i32
    %c0_i32_0 = arith.constant 0 : i32
    %c0_i32_1 = arith.constant 0 : i32
    return %c0_i32, %c0_i32_0 : i32, i32
  }
  func.func @transform_4(%arg0: i32) -> (i32, i32) {
    %c0_i32 = arith.constant 0 : i32
    %c0_i32_0 = arith.constant 0 : i32
    %c0_i32_1 = arith.constant 0 : i32
    return %c0_i32, %c0_i32_0 : i32, i32
  }
  func.func @transform_5(%arg0: i32) -> (i32, i32) {
    %c0_i32 = arith.constant 0 : i32
    %c0_i32_0 = arith.constant 0 : i32
    %c0_i32_1 = arith.constant 0 : i32
    return %c0_i32, %c0_i32_0 : i32, i32
  }
  func.func @transform_6(%arg0: i32) -> (i32, i32) {
    %c0_i32 = arith.constant 0 : i32
    %c0_i32_0 = arith.constant 0 : i32
    %c0_i32_1 = arith.constant 0 : i32
    return %c0_i32, %c0_i32_0 : i32, i32
  }
  func.func @transform_7(%arg0: i32) -> (i32, i32) {
    %c0_i32 = arith.constant 0 : i32
    %c0_i32_0 = arith.constant 0 : i32
    return %c0_i32, %arg0 : i32, i32
  }
}

</mosaic_0001>

<bundles_post_ra>
// kernel: tpu_custom_call.1
= control target key start
LH: loop header
LB: loop body
LE: loop exit
PB: predicated region body
PF: predicated region fallthrough
CT: control target
= control target key end

     0   :  { %12 = vsyncpa [#allocation3], 0  ;;  %s1143_s0 = inlined_call_operand.vmem [shape: f32[8,256], index: 0, kind: input, shape index: {}]   ;;  %s1144_s1 = inlined_call_operand.vmem [shape: f32[16,64], index: 1, kind: input, shape index: {}]   ;;  %s1145_s2 = inlined_call_operand.vmem [shape: f32[16,1], index: 2, kind: input, shape index: {}]   ;;  %s1146_s3 = inlined_call_operand.vmem [shape: f32[8,40], index: 3, kind: input, shape index: {}]   ;;  %s1147_s4 = inlined_call_operand.vmem [shape: f32[8,1], index: 4, kind: input, shape index: {}]   ;;  %s1148_s5 = inlined_call_operand.vmem [shape: f32[8,24], index: 5, kind: input, shape index: {}]   ;;  %s1149_s6 = inlined_call_operand.vmem [shape: f32[8,1], index: 6, kind: input, shape index: {}]   ;;  %s1150_s7 = inlined_call_operand.hbm [shape: f32[8,256], index: 7, kind: output, shape index: {}]  }
   0x1   :  { %14 = vsyncpa [#allocation3 + $0x1], 0  ;;  %s981_s24 = smov 0   ;;  %s983_s25 = smov 0  }
   0x2   :  { %s985_s26 = smov 0   ;;  %s987_s27 = smov 0  }
   0x3 LB: > { %s1002_s28 = sadd.s32 4294967295, %s927_s27   ;;  %s706_s29 = sadd.s32 4294967294, %s927_s27   ;;  %s927_s27 = sphi %s987_s27, %s1156_s27   ;;  %s923_s26 = sphi %s985_s26, %s1155_s26   ;;  %s919_s25 = sphi %s983_s25, %s1154_s25   ;;  %s915_s24 = sphi %s981_s24, %s1153_s24  }
   0x4   : > { %s1006_s30 = sadd.s32 1, %s927_s27   ;;  %s179_s8 = sadd.s32 1, %s923_s26 }
   0x5   : > { %s176_s9 = ssub.s32 %s927_s27, %s1006_s30  ;;  %p189_p0 = scmp.ne.s32.totalorder %s923_s26, %s919_s25 }
   0x6   : > { %p177_p1 = scmp.eq.s32.totalorder %s176_s9, 0  ;;  %p190_p2 = scmp.eq.s32.totalorder %s1002_s28, 1 }
   0x7   : > { %p195_p3 = scmp.ne.s32.totalorder %s919_s25, %s915_s24  ;;  %p196_p4 = scmp.eq.s32.totalorder %s706_s29, 1 }
   0x8   : > { %s1017_s10 = scalar_select %p177_p1, %s923_s26, %s179_s8  }
   0x9   : > { %p1019_p5 = por %p190_p2, %p189_p0  ;;  %p1023_p6 = por %p196_p4, %p195_p3 }
   0xa   : > { %p709_p7 = scmp.ge.s32.totalorder %s927_s27, 1  ;;  %p239_p8 = scmp.lt.s32.totalorder %s927_s27, 3 }
   0xc   : > { %p240_p9 = pnand %p709_p7, %p239_p8 }
   0xd   : > { %p270_p10 = scmp.lt.s32.totalorder (!%p240_p9), %s1002_s28, 1  ;;  %s929_s18 = smov (!%p240_p9), 3   ;;  %v352_v1 = vld [vmem:[%s1144_s1] sm:$0xff] (!%p240_p9)  ;;  %vm366_vm0 = vcmask (!%p240_p9), 523264   ;;  %v936_v3 = vmov (!%p240_p9), 0   ;;  %v275_v4 = vlaneseq (!%p240_p9)  ;;  %v937_v12 = vmov (!%p240_p9), 0.0  }
   0xe   : > { %243 = sbr.rel (%p240_p9) target bundleno = 1082 (0x43a), region = 48  ;;  %s930_s19 = smov (!%p240_p9), 1   ;;  %763 = vmatprep.mubr.msk.f32.mxu0 (!%p240_p9), %vm366_vm0, %v352_v1  ;;  %v354_v2 = vld [vmem:[%s1145_s2] sm:$0xff] (!%p240_p9)  ;;  %863 = vset.pattern.permute.xlu1 (!%p240_p9), %v936_v3  ;;  %v353_v39 = vld [vmem:[%s1144_s1 + $0x8] sm:$0xff] (!%p240_p9)  ;;  %v938_v40 = vmov (!%p240_p9), 0.0|0.0   ;;  %vm939_vm8 = vmmov (!%p240_p9), 0  }
   0xf   : > { %s931_s20 = smov (!%p240_p9), 2   ;;  %s932_s21 = smov (!%p240_p9), 127   ;;  %864 = vset.pattern.permute.xlu0 (!%p240_p9), %v936_v3  ;;  %v276_v5 = vand.u32 (!%p240_p9), 127, %v275_v4  ;;  %804 = vmatprep.subr.bf16.mxu1 (!%p240_p9), %v938_v40  ;;  %v462_v46 = vld [vmem:[%s1147_s4] sm:$0xff] (!%p240_p9)  ;;  %vm468_vm9 = vcmask (!%p240_p9), 326656   ;;  %vm556_vm10 = vcmask (!%p240_p9), 195584  }
  0x10   : > { %s933_s22 = smov (!%p240_p9), 126   ;;  %s934_s23 = smov (!%p240_p9), 125   ;;  %776 = vmatprep.mubr.msk.f32.mxu1 (!%p240_p9), %vm939_vm8, %v937_v12  ;;  %v550_v47 = vld [vmem:[%s1149_s6] sm:$0xff] (!%p240_p9) }
  0x11   : > { %v301_v6 = vadd.s32 (!%p240_p9), 4294967295, %v276_v5  ;;  %v289_v7 = vadd.s32 (!%p240_p9), 4294967293, %v276_v5  ;;  %v295_v8 = vadd.s32 (!%p240_p9), 4294967294, %v276_v5  ;;  %v307_v9 = vadd.s32 (!%p240_p9), 1, %v276_v5  ;;  %v461_v58 = vld [vmem:[%s1146_s3] sm:$0xff] (!%p240_p9)  ;;  %s724_s15 = sshll.u32 (!%p240_p9), %s1002_s28, 7 }
  0x12   : > { %v313_v10 = vadd.s32 (!%p240_p9), 2, %v276_v5  ;;  %v319_v15 = vadd.s32 (!%p240_p9), 3, %v276_v5  ;;  %v325_v19 = vadd.s32 (!%p240_p9), 4, %v276_v5  ;;  %s1101_s29 = scalar_lea.hbm (!%p240_p9), %s1150_s7, %s724_s15 }
  0x13   : > { %vm302_vm1 = vcmp.ge.s32.totalorder (!%p240_p9), %v301_v6, 0  ;;  %vm290_vm2 = vcmp.ge.s32.totalorder (!%p240_p9), %v289_v7, 0  ;;  %vm296_vm3 = vcmp.ge.s32.totalorder (!%p240_p9), %v295_v8, 0  ;;  %vm309_vm4 = vcmp.lt.s32.totalorder (!%p240_p9), %v307_v9, 128  ;;  %v549_v6 = vld [vmem:[%s1148_s5] sm:$0xff] (!%p240_p9) }
  0x14   : > { %v1046_v13 = vsel (!%p240_p9), %vm302_vm1, 1.0, %v937_v12  ;;  %v712_v16 = vsel (!%p240_p9), %vm290_vm2, 1.0, %v937_v12  ;;  %v713_v17 = vsel (!%p240_p9), %vm296_vm3, 1.0, %v937_v12  ;;  %vm315_vm5 = vcmp.lt.s32.totalorder (!%p240_p9), %v313_v10, 128 }
  0x15   : > { %s271_s13 = scalar_select %p270_p10, %s1002_s28, 1  ;;  %v1052_v21 = vsel %vm309_vm4, 1.0, %v937_v12  ;;  %vm321_vm6 = vcmp.lt.s32.totalorder %v319_v15, 128  ;;  %v716_v25 = vsel %vm315_vm5, 1.0, %v937_v12  ;;  %vm327_vm7 = vcmp.lt.s32.totalorder %v325_v19, 128 }
  0x16   : > { %v717_v30 = vsel %vm321_vm6, 1.0, %v937_v12  ;;  %v718_v33 = vsel %vm327_vm7, 1.0, %v937_v12  ;;  %s940_s28 = smov [#allocation2]  }
  0x17   : > { %s711_s14 = sshll.u32 %s271_s13, 3  ;;  %s869_s8 = sshll.u32 %s940_s28, 4  ;;  %s870_s8 = int_to_ptr.vmem [resolvable:$false] %s869_s8 }
  0x18   : > { %s273_s17 = scalar_lea.vmem %s1143_s0, %s711_s14  ;;  %s935_s14 = smov 124  }
  0x19   : > { %v274_v0 = vld [vmem:[%s273_s17] sm:$0xff]  ;;  %s871_s9 = scalar_lea.vmem %s870_s8, 256 }
  0x1a   : > { %331 = vrot.lane.b32.xlu0 %v274_v0, %s929_s18  ;;  %337 = vrot.lane.b32.xlu1 %v274_v0, %s930_s19 }
  0x1e   : > { %334 = vrot.lane.b32.xlu0 %v274_v0, %s931_s20  ;;  %340 = vrot.lane.b32.xlu1 %v274_v0, %s932_s21 }
  0x22   : > { %343 = vrot.lane.b32.xlu0 %v274_v0, %s933_s22  ;;  %346 = vrot.lane.b32.xlu1 %v274_v0, %s934_s23 }
  0x26   : > { %349 = vrot.lane.b32.xlu0 %v274_v0, %s935_s14  ;;  %358 = vperm.xlu1 %863, %v354_v2  }
  0x8c   : > { %v332_v11 = vpop.permute.xlu0 %331  ;;  %v338_v14 = vpop.permute.xlu1 %337 }
  0x8d   : > { %v339_v18 = vmul.f32 %v1046_v13, %v338_v14  ;;  %v333_v23 = vmul.f32 %v712_v16, %v332_v11 }
  0x8f   : > { %v792_v26 = vpack.c.bf16 %v274_v0, %v339_v18  ;;  %v355_v0 = vld [vmem:[%s1145_s2 + $0x8] sm:$0xff] }
  0x90   : > { %v335_v20 = vpop.permute.xlu0 %334  ;;  %v341_v22 = vpop.permute.xlu1 %340 }
  0x91   : > { %v336_v24 = vmul.f32 %v713_v17, %v335_v20  ;;  %v342_v28 = vmul.f32 %v1052_v21, %v341_v22 }
  0x93   : > { %v788_v27 = vpack.c.bf16 %v336_v24, %v333_v23 }
  0x94   : > { %v344_v29 = vpop.permute.xlu0 %343  ;;  %v347_v31 = vpop.permute.xlu1 %346 }
  0x95   : > { %789 = vmatprep.subr.bf16.mxu0 %v788_v27  ;;  %v345_v32 = vmul.f32 %v716_v25, %v344_v29  ;;  %v348_v35 = vmul.f32 %v717_v30, %v347_v31 }
  0x96   : > { %791 = vmatpush3.bf16.msra.mxu0 %v788_v27 }
  0x97   : > { %v796_v34 = vpack.c.bf16 %v345_v32, %v342_v28  ;;  %793 = vmatprep.subr.bf16.mxu0 %v792_v26 }
  0x98   : > { %v350_v36 = vpop.permute.xlu0 %349 }
  0x99   : > { %v351_v37 = vmul.f32 %v718_v33, %v350_v36 }
  0x9a   : > { %795 = vmatpush3.bf16.msra.mxu0 %v792_v26 }
  0x9b   : > { %v800_v38 = vpack.c.bf16 %v351_v37, %v348_v35  ;;  %797 = vmatprep.subr.bf16.mxu0 %v796_v34 }
  0x9e   : > { %799 = vmatpush3.bf16.msra.mxu0 %v796_v34 }
  0x9f   : > { %801 = vmatprep.subr.bf16.mxu0 %v800_v38 }
  0xa2   : > { %803 = vmatpush3.bf16.msra.mxu0 %v800_v38 }
  0xa5   : > { %764 = vmatmul.mubr.msk.f32.vlgmr.msra.gmra.mrb[0].mxu0 %vm366_vm0, %v353_v39  ;;  %v359_v41 = vpop.permute.xlu1 %358 }
 0x178   : > { %v1062_v42 = vpop.f32.mrb[0].mxu0 }
 0x179   : > { %v439_v43 = vpop.f32.mrb[1].mxu0 }
 0x17a   : > { %v440_v44 = vadd.f32 %v439_v43, %v359_v41 }
 0x17c   : > { %v448_v45 = vmax.f32 %v440_v44, 0.0 }
 0x17e   : > { %452 = vrot.lane.b32.xlu1 %v448_v45, %s930_s19  ;;  %449 = vrot.lane.b32.xlu0 %v448_v45, %s931_s20 }
 0x182   : > { %458 = vrot.lane.b32.xlu1 %v448_v45, %s933_s22  ;;  %455 = vrot.lane.b32.xlu0 %v448_v45, %s932_s21 }
 0x186   : > { %465 = vperm.xlu0 %864, %v462_v46  }
 0x18a   : > { %553 = vperm.xlu0 %864, %v550_v47  }
 0x1f0   : > { %v453_v48 = vpop.permute.xlu1 %452  ;;  %v450_v49 = vpop.permute.xlu0 %449 }
 0x1f1   : > { %v454_v50 = vmul.f32 %v1046_v13, %v453_v48  ;;  %v451_v51 = vmul.f32 %v713_v17, %v450_v49 }
 0x1f3   : > { %v805_v52 = vpack.c.bf16 %v454_v50, %v451_v51 }
 0x1f4   : > { %v456_v53 = vpop.permute.xlu0 %455  ;;  %v459_v56 = vpop.permute.xlu1 %458 }
 0x1f5   : > { %v457_v54 = vmul.f32 %v1052_v21, %v456_v53  ;;  %806 = vmatpush3.bf16.msra.mxu1 %v805_v52  ;;  %v460_v57 = vmul.f32 %v716_v25, %v459_v56 }
 0x1f6   : > { %807 = vmatprep.subr.bf16.mxu1 %v938_v40 }
 0x1f7   : > { %v808_v55 = vpack.c.bf16 %v457_v54, %v448_v45 }
 0x1f9   : > { %809 = vmatpush3.bf16.msra.mxu1 %v808_v55 }
 0x1fa   : > { %774 = vmatprep.subr.mxu1 %v937_v12 }
 0x1fd   : > { %775 = vmatpush3.msra.mxu1 %v460_v57 }
 0x1fe   : > { %777 = vmatmul.mubr.msk.f32.vlgmr.msra.gmra.mrb[0].mxu1 %vm468_vm9, %v461_v58  ;;  %810 = vmatprep.subr.bf16.mxu1 %v938_v40 }
 0x1ff   : > { %785 = vmatprep.mubr.msk.f32.mxu1 %vm939_vm8, %v937_v12 }
 0x205   : > { %v466_v59 = vpop.permute.xlu0 %465 }
 0x209   : > { %v554_v7 = vpop.permute.xlu0 %553 }
 0x2d1   : > { %v538_v60 = vpop.f32.mrb[0].mxu1 }
 0x2d2   : > { %v539_v61 = vadd.f32 %v538_v60, %v466_v59  ;;  %v778_v62 = vpop.f32.mrb[1].mxu1 }
 0x2d4   : > { %v542_v63 = vmax.f32 %v539_v61, 0.0 }
 0x2d6   : > { %543 = vrot.lane.b32.xlu1 %v542_v63, %s930_s19 }
 0x2da   : > { %546 = vrot.lane.b32.xlu1 %v542_v63, %s932_s21  ;;  %s267_s21 = sand.u32 1, %s919_s25  }
 0x2db   : > { %s710_s14 = sshll.u32 %s267_s21, 3  ;;  %s634_s20 = scalar_lea.sflag [#allocation3], %s267_s21 }
 0x2dc   : > { %s269_s16 = scalar_lea.vmem [#allocation2], %s710_s14 }
 0x2dd   : > { %s647_s17 = sshll.u32 %s269_s16, 4  ;;  %s1103_s17 = int_to_ptr.vmem [resolvable:$true] %s647_s17 }
 0x2de   : > { %363 = vperm.xlu1 %863, %v355_v0   ;;  %s865_s22 = scalar_lea.vmem %s1103_s17, 128  ;;  %p872_p0 = scmp.lt.s32.totalorder %s1103_s17, %s870_s8 }
 0x2df   : > { %p866_p11 = scmp.ne.s32.totalorder %s1103_s17, %s865_s22  ;;  %p873_p1 = scmp.lt.s32.totalorder %s871_s9, %s865_s22 }
 0x2e1   : > { %p867_p12 = pnand %p866_p11, %p1019_p5  ;;  %p874_p2 = por %p873_p1, %p872_p0 }
 0x2e3   : > { %p868_p13 = pneg %p867_p12 }
 0x2e5   : > { %p875_p3 = pnand %p874_p2, %p868_p13 }
 0x348   : > { %v544_v1 = vpop.permute.xlu1 %543 }
 0x349   : > { %v545_v2 = vmul.f32 %v1046_v13, %v544_v1 }
 0x34b   : > { %v811_v3 = vpack.c.bf16 %v542_v63, %v545_v2 }
 0x34c   : > { %v547_v4 = vpop.permute.xlu1 %546 }
 0x34d   : > { %812 = vmatpush3.bf16.msra.mxu1 %v811_v3  ;;  %v548_v5 = vmul.f32 %v1052_v21, %v547_v4 }
 0x34e   : > { %783 = vmatprep.subr.mxu1 %v937_v12 }
 0x351   : > { %784 = vmatpush3.msra.mxu1 %v548_v5 }
 0x352   : > { %786 = vmatmul.mubr.msk.f32.vlgmr.msra.gmra.mrb[2].mxu1 %vm556_vm10, %v549_v6 }
 0x35d   : > { %v364_v8 = vpop.permute.xlu1 %363 }
 0x35e   : > { %v445_v12 = vadd.f32 %v1062_v42, %v364_v8 }
 0x425   : > { %v626_v9 = vpop.f32.mrb[2].mxu1 }
 0x426   : > { %v627_v10 = vadd.f32 %v626_v9, %v554_v7  ;;  %v787_v11 = vpop.f32.mrb[3].mxu1 }
 0x428   : > { %v630_v13 = vmax.f32 %v627_v10, 0.0 }
 0x42a   : > { %v631_v14 = vadd.f32 %v630_v13, %v445_v12 }
 0x42c   : > { %632 = vst [vmem:[%s269_s16] sm:$0xff] %v631_v14 }
 0x42d   : > { %878 = shalt.err (!%p875_p3)
}
 0x42e   : > { %s879_s13 = scalar_lea.hbm %s1101_s29, 128  ;;  %s883_s14 = scalar_lea.hbm %s1150_s7, 256 }
 0x42f   : > { %p880_p4 = scmp.ne.s32.totalorder %s1101_s29, %s879_s13  ;;  %p884_p9 = scmp.lt.u32.totalorder %s1101_s29, %s1150_s7 }
 0x430   : > { %p885_p10 = scmp.lt.u32.totalorder %s883_s14, %s879_s13  ;;  %p887_p12 = scmp.lt.u32.totalorder %s879_s13, %s1101_s29 }
 0x431   : > { %p881_p7 = pnand %p880_p4, %p1019_p5 }
 0x432   : > { %p886_p11 = por %p885_p10, %p884_p9 }
 0x433   : > { %p882_p8 = pneg %p881_p7 }
 0x434   : > { %p888_p13 = por %p887_p12, %p886_p11 }
 0x436   : > { %p889_p0 = pnand %p888_p13, %p882_p8 }
 0x438   : > { %892 = shalt.err (!%p889_p0)
}
 0x439   : > { %813 = dma.vmem_to_hbm [thread:$0]  (%p1019_p5), %s1103_s17, 128, %s1101_s29, %s634_s20  }
 0x43a PF: > { %p819_p1 = scmp.ge.s32.totalorder %s927_s27, 2  ;;  %s659_s18 = sand.u32 1, %s915_s24  }
 0x43b   : > { %s660_s23 = scalar_lea.sflag [#allocation3], %s659_s18 }
 0x43c   : > { %p816_p2 = pnand %p819_p1, %p1023_p6 }
 0x43e   : > { %910 = dma.done.wait (!%p816_p2), %s660_s23, 128  }
 0x43f   : > { %912 = vsyncadd (!%p816_p2), %s660_s23, 4294967168  ;;  %p17_p3 = scmp.ge.s32.totalorder %s1006_s30, 4   ;;  %s1153_s24 = smov %s919_s25 }
 0x440   : > { %s1154_s25 = smov %s923_s26  ;;  %s1155_s26 = smov %s1017_s10 }
 0x441   : > { %s1156_s27 = smov %s1006_s30  ;;  %19 = sbr.rel (!%p17_p3) target bundleno = 3 (0x3), region = 83 }
 0x448   :  { %665 = vsyncpa [#allocation3], 1 }
 0x449   :  { %667 = vsyncpa [#allocation3 + $0x1], 1 }

</bundles_post_ra>
